<compile_context>
chip_gen: v6e
topology: v6e:2x2x1
jax: 0.10.0
libtpu: 0.0.40
codegen_flags: <defaults>
</compile_context>

<pallas_src>
import functools

import jax
import jax.numpy as jnp
from jax import lax
from jax.experimental import pallas as pl
from jax.experimental.pallas import tpu as pltpu


# ---------------------------------------------------------------------------
# Helpers
# ---------------------------------------------------------------------------
def _pick_tile(dim, preferred, align):
    """Largest tile <= preferred that divides `dim` and is a multiple of `align`.

    Falls back to the full extent (always a legal BlockSpec block) when the dim
    is small or has no aligned divisor.
    """
    if dim <= preferred or dim % align != 0:
        return dim
    t = (preferred // align) * align
    while t >= align:
        if dim % t == 0:
            return t
        t -= align
    return dim


# ---------------------------------------------------------------------------
# Tiled linear (x @ W + b) kernel — Q/K/V (optionally fused) and final proj.
# ---------------------------------------------------------------------------
def _linear_kernel(x_ref, w_ref, b_ref, o_ref, acc_ref, *, compute_dtype):
    k = pl.program_id(2)

    @pl.when(k == 0)
    def _init():
        acc_ref[...] = jnp.zeros_like(acc_ref)

    acc_ref[...] += jnp.dot(
        x_ref[...].astype(compute_dtype),
        w_ref[...].astype(compute_dtype),
        preferred_element_type=jnp.float32,
    )

    @pl.when(k == pl.num_programs(2) - 1)
    def _finish():
        o_ref[...] = (acc_ref[...] + b_ref[...].astype(jnp.float32)).astype(o_ref.dtype)


def pallas_linear(x2d, w, b, *, compute_dtype=jnp.bfloat16,
                  tm_pref=256, tn_pref=256, tk_pref=512):
    """x2d: (M, Din), w: (Din, Dout), b: (Dout,) -> (M, Dout)."""
    M, Din = x2d.shape
    Dout = w.shape[1]

    tm = _pick_tile(M, tm_pref, 8)
    tn = _pick_tile(Dout, tn_pref, 128)
    tk = _pick_tile(Din, tk_pref, 128)

    kernel = functools.partial(_linear_kernel, compute_dtype=compute_dtype)

    return pl.pallas_call(
        kernel,
        out_shape=jax.ShapeDtypeStruct((M, Dout), x2d.dtype),
        grid_spec=pltpu.PrefetchScalarGridSpec(
            num_scalar_prefetch=0,
            grid=(M // tm, Dout // tn, Din // tk),
            in_specs=[
                pl.BlockSpec((tm, tk), lambda i, j, k: (i, k)),
                pl.BlockSpec((tk, tn), lambda i, j, k: (k, j)),
                pl.BlockSpec((1, tn), lambda i, j, k: (0, j)),
            ],
            out_specs=pl.BlockSpec((tm, tn), lambda i, j, k: (i, j)),
            scratch_shapes=[pltpu.VMEM((tm, tn), jnp.float32)],
        ),
        compiler_params=pltpu.CompilerParams(
            dimension_semantics=("parallel", "parallel", "arbitrary")
        ),
    )(x2d, w, b.reshape(1, Dout))


# ---------------------------------------------------------------------------
# Multi-head scaled dot-product attention: one batch element per grid step,
# all heads handled inside the kernel via lane-slices of the (N, D) blocks.
# This avoids host-side head split/merge transposes entirely.
# ---------------------------------------------------------------------------
def _mha_attention_kernel(*refs, num_heads, d_heads, has_mask, return_weights,
                          compute_dtype):
    q_ref, k_ref, v_ref = refs[0], refs[1], refs[2]
    idx = 3
    mask_ref = None
    if has_mask:
        mask_ref = refs[idx]
        idx += 1
    o_ref = refs[idx]
    idx += 1
    w_ref = refs[idx] if return_weights else None

    inv_sqrt_dh = 1.0 / float(d_heads) ** 0.5
    # Fold the 1/sqrt(d_heads) scale into Q (touches Nq*D, not Nq*Nk per head).
    q = (q_ref[...] * inv_sqrt_dh).astype(compute_dtype)     # (Nq, D)
    k = k_ref[...].astype(compute_dtype)                     # (Nk, D)
    v = v_ref[...].astype(compute_dtype)                     # (Nk, D)

    # Large-but-finite additive bias, mirroring torch's `mask * finfo.min`
    # (single VPU multiply); hoisted out of the head loop, shared by all heads.
    neg_bias = None
    if has_mask:
        neg_bias = mask_ref[...] * jnp.float32(-1e30)         # (Nq, Nk)

    for h in range(num_heads):
        lo = h * d_heads
        hi = lo + d_heads
        qh = q[:, lo:hi]                                      # (Nq, dh)
        kh = k[:, lo:hi]                                      # (Nk, dh)
        vh = v[:, lo:hi]                                      # (Nk, dh)

        # QK^T without materializing K.T: contract last dims of both operands.
        logits = lax.dot_general(
            qh, kh, (((1,), (1,)), ((), ())),
            preferred_element_type=jnp.float32,
        )                                                     # (Nq, Nk), f32
        if neg_bias is not None:
            logits = logits + neg_bias

        m = jnp.max(logits, axis=-1, keepdims=True)
        p = jnp.exp(logits - m)
        denom = jnp.sum(p, axis=-1, keepdims=True)
        weights = p * pl.reciprocal(denom, approx=True)       # softmax, f32

        if w_ref is not None:
            w_ref[h] = weights.astype(w_ref.dtype)

        attn_h = jnp.dot(weights.astype(compute_dtype), vh,
                         preferred_element_type=jnp.float32)  # (Nq, dh)
        # Head-concatenated layout: no merge transpose needed afterwards.
        o_ref[:, lo:hi] = attn_h.astype(o_ref.dtype)


def pallas_mha_attention(q, k, v, mask, num_heads, *, return_weights=True,
                         compute_dtype=jnp.bfloat16):
    """q: (B, Nq, D), k/v: (B, Nk, D), mask: (B, Nq, Nk) or None."""
    B, Nq, D = q.shape
    Nk = k.shape[1]
    d_heads = D // num_heads
    has_mask = mask is not None

    # Rough per-step VMEM residency (f32 bytes, x2 double-buffering) checked
    # against the v7x 64 MiB ceiling (use 48 MiB to leave headroom).
    per_step = 4 * (2 * Nq * D + 2 * Nk * D
                    + (Nq * Nk if has_mask else 0)
                    + (num_heads * Nq * Nk if return_weights else 0))
    if 2 * per_step > 48 * 1024 * 1024:
        # TODO(synk): flash-style Nq/Nk tiling for long sequences.
        raise ValueError("attention block exceeds the VMEM budget; tile Nq/Nk")

    kernel = functools.partial(
        _mha_attention_kernel,
        num_heads=num_heads, d_heads=d_heads, has_mask=has_mask,
        return_weights=return_weights, compute_dtype=compute_dtype,
    )

    in_specs = [
        pl.BlockSpec((None, Nq, D), lambda b: (b, 0, 0)),
        pl.BlockSpec((None, Nk, D), lambda b: (b, 0, 0)),
        pl.BlockSpec((None, Nk, D), lambda b: (b, 0, 0)),
    ]
    args = [q, k, v]
    if has_mask:
        in_specs.append(pl.BlockSpec((None, Nq, Nk), lambda b: (b, 0, 0)))
        args.append(mask)

    o_shape = jax.ShapeDtypeStruct((B, Nq, D), q.dtype)
    o_spec = pl.BlockSpec((None, Nq, D), lambda b: (b, 0, 0))
    if return_weights:
        out_shape = (o_shape,
                     jax.ShapeDtypeStruct((B, num_heads, Nq, Nk), q.dtype))
        out_specs = (o_spec,
                     pl.BlockSpec((None, num_heads, Nq, Nk),
                                  lambda b: (b, 0, 0, 0)))
    else:
        out_shape = o_shape
        out_specs = o_spec

    results = pl.pallas_call(
        kernel,
        out_shape=out_shape,
        grid=(B,),
        in_specs=in_specs,
        out_specs=out_specs,
        compiler_params=pltpu.CompilerParams(
            dimension_semantics=("parallel",)   # 2 TCs on v7x take half the batch each
        ),
    )(*args)

    if return_weights:
        attn, weights = results
        return attn, weights
    return results, None


# ---------------------------------------------------------------------------
# MultiHeadAttention wrapper (parameter container + glue).
# ---------------------------------------------------------------------------
class MultiHeadAttentionPallas:
    def __init__(self, d_embedding, num_heads, key):
        if d_embedding % num_heads != 0:
            raise ValueError("d_embedding must be divisible by num_heads")
        self.d_embedding = d_embedding
        self.num_heads = num_heads
        self.d_heads = d_embedding // num_heads

        ks = jax.random.split(key, 8)
        bound = 1.0 / jnp.sqrt(d_embedding)  # matches torch.nn.Linear init scale

        def w(k):
            return jax.random.uniform(k, (d_embedding, d_embedding),
                                      jnp.float32, -bound, bound)

        def b(k):
            return jax.random.uniform(k, (d_embedding,), jnp.float32, -bound, bound)

        self.Wq, self.bq = w(ks[0]), b(ks[1])
        self.Wk, self.bk = w(ks[2]), b(ks[3])
        self.Wv, self.bv = w(ks[4]), b(ks[5])
        self.Wo, self.bo = w(ks[6]), b(ks[7])

        # Fused (D, 3D) QKV projection for the self-attention path: activations
        # are streamed from HBM once and the output lane dim is 3x wider.
        self.Wqkv = jnp.concatenate([self.Wq, self.Wk, self.Wv], axis=1)
        self.bqkv = jnp.concatenate([self.bq, self.bk, self.bv], axis=0)

    def __call__(self, queries, keys, values, mask=None, cache=None,
                 return_weights=True, compute_dtype=jnp.bfloat16):
        B, Nq, D = queries.shape

        if queries is keys and keys is values:
            # Self-attention: one fused projection matmul.
            qkv = pallas_linear(queries.reshape(B * Nq, D), self.Wqkv, self.bqkv,
                                compute_dtype=compute_dtype)
            q = qkv[:, :D].reshape(B, Nq, D)
            k = qkv[:, D:2 * D].reshape(B, Nq, D)
            v = qkv[:, 2 * D:].reshape(B, Nq, D)
        else:
            Nk_new = keys.shape[1]
            q = pallas_linear(queries.reshape(B * Nq, D), self.Wq, self.bq,
                              compute_dtype=compute_dtype).reshape(B, Nq, D)
            k = pallas_linear(keys.reshape(B * Nk_new, D), self.Wk, self.bk,
                              compute_dtype=compute_dtype).reshape(B, Nk_new, D)
            v = pallas_linear(values.reshape(B * Nk_new, D), self.Wv, self.bv,
                              compute_dtype=compute_dtype).reshape(B, Nk_new, D)

        if cache is not None:
            # cache['keys'/'values']: (B, i, num_heads, d_heads) head-split
            # layout (matches the torch module). Reshaping to (B, i, D) recovers
            # the head-concatenated layout this kernel uses (each head occupies
            # a contiguous d_heads slice of the last dim), so the fast-decoding
            # concat is pure host-side glue with no extra transposes.
            prev_k = cache['keys'].reshape(B, -1, D)
            prev_v = cache['values'].reshape(B, -1, D)
            k = jnp.concatenate([prev_k, k], axis=1)
            v = jnp.concatenate([prev_v, v], axis=1)
            cache['keys'] = k.reshape(B, -1, self.num_heads, self.d_heads)
            cache['values'] = v.reshape(B, -1, self.num_heads, self.d_heads)

        mask_arr = None if mask is None else mask.astype(jnp.float32)

        # No head split/merge transposes: attention kernel works directly on the
        # (B, N, D) layout and writes back head-concatenated (B, Nq, D).
        attn, attn_weights = pallas_mha_attention(
            q, k, v, mask_arr, self.num_heads,
            return_weights=return_weights, compute_dtype=compute_dtype)

        out = pallas_linear(attn.reshape(B * Nq, D), self.Wo, self.bo,
                            compute_dtype=compute_dtype).reshape(B, Nq, D)
        return out, attn_weights


# ---------------------------------------------------------------------------
# Pure-JAX reference (mirrors the torch module exactly) for validation.
# ---------------------------------------------------------------------------
def reference_forward(m, queries, keys, values, mask):
    B, Nq, D = queries.shape
    Nk = keys.shape[1]
    q = queries @ m.Wq + m.bq
    k = keys @ m.Wk + m.bk
    v = values @ m.Wv + m.bv
    q = jnp.transpose(q.reshape(B, Nq, m.num_heads, m.d_heads), (0, 2, 1, 3))
    k = jnp.transpose(k.reshape(B, Nk, m.num_heads, m.d_heads), (0, 2, 1, 3))
    v = jnp.transpose(v.reshape(B, Nk, m.num_heads, m.d_heads), (0, 2, 1, 3))
    logits = jnp.einsum("bhqd,bhkd->bhqk", q, k) / jnp.sqrt(jnp.float32(m.d_heads))
    if mask is not None:
        logits = logits + mask[:, None, :, :] * jnp.finfo(jnp.float32).min
    weights = jax.nn.softmax(logits, axis=-1)
    attn = jnp.einsum("bhqk,bhkd->bhqd", weights, v)
    attn = jnp.transpose(attn, (0, 2, 1, 3)).reshape(B, Nq, D)
    out = attn @ m.Wo + m.bo
    return out, weights


if __name__ == "__main__":
    B, Nq, Nk, D, H = 2, 8, 8, 32, 4

    root = jax.random.PRNGKey(0)
    k_params, k_q, k_k, k_v, k_k2, k_v2 = jax.random.split(root, 6)

    mha = MultiHeadAttentionPallas(D, H, k_params)

    x = jax.random.normal(k_q, (B, Nq, D), jnp.float32)
    keys_in = jax.random.normal(k_k, (B, Nk, D), jnp.float32)
    values_in = jax.random.normal(k_v, (B, Nk, D), jnp.float32)

    # causal-style mask: 1 where attention is disallowed, 0 elsewhere
    causal = (jnp.arange(Nk)[None, :] > jnp.arange(Nq)[:, None]).astype(jnp.float32)
    mask = jnp.broadcast_to(causal, (B, Nq, Nk))

    # 1) Self-attention (fused QKV projection), f32 compute path — strict check.
    out1, w1 = mha(x, x, x, mask, compute_dtype=jnp.float32)
    jax.block_until_ready((out1, w1))
    ref_out1, ref_w1 = reference_forward(mha, x, x, x, mask)
    assert out1.shape == (B, Nq, D)
    assert w1.shape == (B, H, Nq, Nk)
    assert jnp.allclose(out1, ref_out1, rtol=5e-3, atol=5e-3)
    assert jnp.allclose(w1, ref_w1, rtol=5e-3, atol=5e-3)

    # 2) Cross-attention, bf16 MXU inputs (performance path) — bf16 tolerance.
    out2, w2 = mha(x, keys_in, values_in, mask, compute_dtype=jnp.bfloat16)
    jax.block_until_ready((out2, w2))
    ref_out2, ref_w2 = reference_forward(mha, x, keys_in, values_in, mask)
    assert out2.shape == (B, Nq, D)
    assert w2.shape == (B, H, Nq, Nk)
    assert jnp.allclose(out2, ref_out2, rtol=1e-1, atol=1e-1)
    assert jnp.allclose(w2, ref_w2, rtol=1e-1, atol=1e-1)

    # 3) Cache fast-decoding path (no mask, f32): incremental call with a
    #    pre-populated KV cache must match the non-cached call on the full keys.
    Np = 4
    keys_prev = jax.random.normal(k_k2, (B, Np, D), jnp.float32)
    values_prev = jax.random.normal(k_v2, (B, Np, D), jnp.float32)
    keys_full = jnp.concatenate([keys_prev, keys_in], axis=1)
    values_full = jnp.concatenate([values_prev, values_in], axis=1)

    out_full, w_full = mha(x, keys_full, values_full, None,
                           compute_dtype=jnp.float32)
    ref_out3, ref_w3 = reference_forward(mha, x, keys_full, values_full, None)
    assert jnp.allclose(out_full, ref_out3, rtol=5e-3, atol=5e-3)
    assert jnp.allclose(w_full, ref_w3, rtol=5e-3, atol=5e-3)

    cache = {
        'keys': pallas_linear(keys_prev.reshape(B * Np, D), mha.Wk, mha.bk,
                              compute_dtype=jnp.float32).reshape(B, Np, H, D // H),
        'values': pallas_linear(values_prev.reshape(B * Np, D), mha.Wv, mha.bv,
                                compute_dtype=jnp.float32).reshape(B, Np, H, D // H),
    }
    out_c, w_c = mha(x, keys_in, values_in, None, cache=cache,
                     compute_dtype=jnp.float32)
    jax.block_until_ready((out_full, out_c))
    assert cache['keys'].shape == (B, Np + Nk, H, D // H)
    assert cache['values'].shape == (B, Np + Nk, H, D // H)
    assert out_c.shape == (B, Nq, D)
    assert w_c.shape == (B, H, Nq, Np + Nk)
    assert jnp.allclose(out_c, out_full, rtol=5e-3, atol=5e-3)
    assert jnp.allclose(w_c, w_full, rtol=5e-3, atol=5e-3)

    print("KERNEL_OK")
</pallas_src>

<mosaic_0001>
module attributes {stable_mosaic.version = 11 : i64} {
  func.func @_linear_kernel(%arg0: i32, %arg1: i32, %arg2: i32, %arg3: memref<16x32xf32, #tpu.memory_space<vmem>>, %arg4: memref<32x96xf32, #tpu.memory_space<vmem>>, %arg5: memref<1x96xf32, #tpu.memory_space<vmem>>, %arg6: memref<16x96xf32, #tpu.memory_space<vmem>>, %arg7: memref<16x96xf32, #tpu.memory_space<vmem>>) attributes {dimension_semantics = [#tpu.dimension_semantics<parallel>, #tpu.dimension_semantics<parallel>, #tpu.dimension_semantics<arbitrary>], iteration_bounds = array<i64: 1, 1, 1>, scalar_prefetch = 0 : i64, scratch_operands = 1 : i64, tpu.core_type = #tpu.core_type<tc>, window_params = [{transform_indices = @transform_0, window_bounds = array<i64: 16, 32>}, {transform_indices = @transform_1, window_bounds = array<i64: 32, 96>}, {transform_indices = @transform_2, window_bounds = array<i64: 1, 96>}, {transform_indices = @transform_3, window_bounds = array<i64: 16, 96>}]} {
    %c0_i32 = arith.constant 0 : i32
    %0 = arith.cmpi eq, %arg2, %c0_i32 : i32
    %1 = arith.extui %0 : i1 to i32
    %c0_i32_0 = arith.constant 0 : i32
    %2 = arith.cmpi ne, %1, %c0_i32_0 : i32
    scf.if %2 {
      %cst_10 = arith.constant 0.000000e+00 : f32
      %12 = vector.broadcast %cst_10 : f32 to vector<16x96xf32>
      %c0_11 = arith.constant 0 : index
      %c0_12 = arith.constant 0 : index
      %13 = vector.load %arg7[%c0_11, %c0_12] : memref<16x96xf32, #tpu.memory_space<vmem>>, vector<16x96xf32>
      tpu.vector_store %arg7[%c0_11, %c0_12], %12 {strides = array<i32>} : memref<16x96xf32, #tpu.memory_space<vmem>>, vector<16x96xf32>,
    } else {
    }
    %c0 = arith.constant 0 : index
    %c0_1 = arith.constant 0 : index
    %3 = vector.load %arg7[%c0, %c0_1] : memref<16x96xf32, #tpu.memory_space<vmem>>, vector<16x96xf32>
    %c0_2 = arith.constant 0 : index
    %c0_3 = arith.constant 0 : index
    %4 = vector.load %arg3[%c0_2, %c0_3] : memref<16x32xf32, #tpu.memory_space<vmem>>, vector<16x32xf32>
    %c0_4 = arith.constant 0 : index
    %c0_5 = arith.constant 0 : index
    %5 = vector.load %arg4[%c0_4, %c0_5] : memref<32x96xf32, #tpu.memory_space<vmem>>, vector<32x96xf32>
    %cst = arith.constant dense<0.000000e+00> : vector<16x96xf32>
    %6 = tpu.matmul %4, %5, %cst {dimension_numbers = #tpu.dot_dimension_numbers<[1], [0], [0], [1], [0, 0, 1, 1], [], []>} : vector<16x32xf32>, vector<32x96xf32>, vector<16x96xf32> -> vector<16x96xf32>
    %7 = arith.addf %3, %6 : vector<16x96xf32>
    %c0_6 = arith.constant 0 : index
    %c0_7 = arith.constant 0 : index
    %8 = vector.load %arg7[%c0_6, %c0_7] : memref<16x96xf32, #tpu.memory_space<vmem>>, vector<16x96xf32>
    tpu.vector_store %arg7[%c0_6, %c0_7], %7 {strides = array<i32>} : memref<16x96xf32, #tpu.memory_space<vmem>>, vector<16x96xf32>,
    %c0_i32_8 = arith.constant 0 : i32
    %9 = arith.cmpi eq, %arg2, %c0_i32_8 : i32
    %10 = arith.extui %9 : i1 to i32
    %c0_i32_9 = arith.constant 0 : i32
    %11 = arith.cmpi ne, %10, %c0_i32_9 : i32
    scf.if %11 {
      %c0_10 = arith.constant 0 : index
      %c0_11 = arith.constant 0 : index
      %12 = vector.load %arg7[%c0_10, %c0_11] : memref<16x96xf32, #tpu.memory_space<vmem>>, vector<16x96xf32>
      %c0_12 = arith.constant 0 : index
      %c0_13 = arith.constant 0 : index
      %13 = vector.load %arg5[%c0_12, %c0_13] : memref<1x96xf32, #tpu.memory_space<vmem>>, vector<1x96xf32>
      %14 = vector.broadcast %13 : vector<1x96xf32> to vector<16x96xf32>
      %15 = arith.addf %12, %14 : vector<16x96xf32>
      %c0_14 = arith.constant 0 : index
      %c0_15 = arith.constant 0 : index
      %16 = vector.load %arg6[%c0_14, %c0_15] : memref<16x96xf32, #tpu.memory_space<vmem>>, vector<16x96xf32>
      tpu.vector_store %arg6[%c0_14, %c0_15], %15 {strides = array<i32>} : memref<16x96xf32, #tpu.memory_space<vmem>>, vector<16x96xf32>,
    } else {
    }
    return
  }
  func.func @transform_0(%arg0: i32, %arg1: i32, %arg2: i32) -> (i32, i32) {
    %c0_i32 = arith.constant 0 : i32
    return %arg0, %arg2 : i32, i32
  }
  func.func @transform_1(%arg0: i32, %arg1: i32, %arg2: i32) -> (i32, i32) {
    %c0_i32 = arith.constant 0 : i32
    return %arg2, %arg1 : i32, i32
  }
  func.func @transform_2(%arg0: i32, %arg1: i32, %arg2: i32) -> (i32, i32) {
    %c0_i32 = arith.constant 0 : i32
    %c0_i32_0 = arith.constant 0 : i32
    return %c0_i32, %arg1 : i32, i32
  }
  func.func @transform_3(%arg0: i32, %arg1: i32, %arg2: i32) -> (i32, i32) {
    %c0_i32 = arith.constant 0 : i32
    return %arg0, %arg1 : i32, i32
  }
}

</mosaic_0001>

<bundles_post_ra>
// kernel: tpu_custom_call.1
= control target key start
LH: loop header
LB: loop body
LE: loop exit
PB: predicated region body
PF: predicated region fallthrough
CT: control target
= control target key end

     0   :  { %8 = vsyncpa [#allocation4], 0  ;;  %s326_s0 = inlined_call_operand.hbm [shape: f32[16,32], index: 0, kind: input, shape index: {}]   ;;  %s327_s1 = inlined_call_operand.hbm [shape: f32[32,96], index: 1, kind: input, shape index: {}]   ;;  %s328_s2 = inlined_call_operand.vmem [shape: f32[1,96], index: 2, kind: input, shape index: {}]   ;;  %s329_s3 = inlined_call_operand.hbm [shape: f32[16,96], index: 3, kind: output, shape index: {}]  }
   0x1   :  { %9 = vsyncpa [#allocation7], 0 }
   0x2   :  { %10 = vsyncpa [#allocation5], 0  ;;  %s271_s12 = smov [#allocation3]  }
   0x3   :  { %s16_s13 = sshll.u32 %s271_s12, 4  ;;  %s17_s13 = int_to_ptr.vmem [resolvable:$true] %s16_s13 }
   0x4   :  { %s213_s14 = scalar_lea.vmem %s17_s13, 256  ;;  %p218_p1 = scmp.lt.s32.totalorder %s17_s13, %s17_s13 }
   0x5   :  { %p214_p0 = scmp.ne.s32.totalorder %s17_s13, %s213_s14  ;;  %p219_p2 = scmp.lt.s32.totalorder %s213_s14, %s213_s14 }
   0x7   :  { %p220_p3 = por %p219_p2, %p218_p1 }
   0x9   :  { %p221_p4 = pnand %p220_p3, %p214_p0 }
   0xb   :  { %224 = shalt.err (!%p221_p4)
}
   0xc   :  { %s272_s15 = smov 128   ;;  %s273_s16 = smov 8  }
   0xd   :  { %22 = dma.hbm_to_vmem [thread:$0]  %s326_s0, 256, %s17_s13, [#allocation4], %s272_s15, %s272_s15, %s273_s16  }
   0xe   :  { %s274_s19 = smov [#allocation6]  }
   0xf   :  { %s28_s20 = sshll.u32 %s274_s19, 4  ;;  %s29_s20 = int_to_ptr.vmem [resolvable:$true] %s28_s20 }
  0x10   :  { %s233_s21 = scalar_lea.vmem %s29_s20, 512  ;;  %p238_p6 = scmp.lt.s32.totalorder %s29_s20, %s29_s20 }
  0x11   :  { %p234_p5 = scmp.ne.s32.totalorder %s29_s20, %s233_s21  ;;  %p239_p7 = scmp.lt.s32.totalorder %s233_s21, %s233_s21 }
  0x13   :  { %p240_p8 = por %p239_p7, %p238_p6 }
  0x15   :  { %p241_p9 = pnand %p240_p8, %p234_p5 }
  0x17   :  { %244 = shalt.err (!%p241_p9)
}
  0x18   :  { %34 = dma.hbm_to_vmem [thread:$0]  %s327_s1, 512, %s29_s20, [#allocation7], %s272_s15, %s272_s15, %s273_s16  }
  0x19   :  { %265 = dma.done.wait [#allocation4], 256  }
  0x1a   :  { %266 = vsyncadd [#allocation4], 4294967040 }
  0x1b   :  { %267 = dma.done.wait [#allocation7], 512  }
  0x1c   :  { %268 = vsyncadd [#allocation7], 4294966784  ;;  %vm47_vm0 = vcmask 785408   ;;  %v275_v0 = vmov 0.0   ;;  %vm58_vm1 = vcmask 261120   ;;  %v57_v1 = vld [vmem:[#allocation6 + $0x18] sm:$0xff] }
  0x1d   :  { %49 = vst.msk [vmem:[#allocation2 + $0x8] sm:$0xff] %vm47_vm0, %v275_v0  ;;  %48 = vst.msk [vmem:[#allocation2] sm:$0xff] %vm47_vm0, %v275_v0  ;;  %v56_v2 = vld [vmem:[#allocation6 + $0x10] sm:$0xff]  ;;  %188 = vmatprep.subr.mxu0 %v57_v1  ;;  %v55_v4 = vld [vmem:[#allocation6 + $0x8] sm:$0xff]  ;;  %s276_s24 = smov [#allocation8]  }
  0x1e   :  { %v52_v3 = vld [vmem:[#allocation3] sm:$0xff]  ;;  %189 = vmatpush3.msra.mxu0 %v57_v1  ;;  %v54_v5 = vld [vmem:[#allocation6] sm:$0xff]  ;;  %v53_v6 = vld [vmem:[#allocation3 + $0x8] sm:$0xff]  ;;  %s166_s25 = sshll.u32 %s276_s24, 4  ;;  %s167_s25 = int_to_ptr.vmem [resolvable:$true] %s166_s25 }
  0x1f   :  { %196 = vmatprep.mubr.msk.f32.mxu0 %vm58_vm1, %v52_v3  ;;  %190 = vmatprep.subr.mxu0 %v56_v2  ;;  %v181_v13 = vld [vmem:[%s328_s2] ss:$0 sm:$0xff]  ;;  %s245_s26 = scalar_lea.vmem %s167_s25, 256  ;;  %p250_p11 = scmp.lt.s32.totalorder %s167_s25, %s167_s25 }
  0x20   :  { %191 = vmatpush3.msra.mxu0 %v56_v2  ;;  %p246_p10 = scmp.ne.s32.totalorder %s167_s25, %s245_s26  ;;  %p251_p12 = scmp.lt.s32.totalorder %s245_s26, %s245_s26 }
  0x21   :  { %192 = vmatprep.subr.mxu0 %v55_v4 }
  0x22   :  { %193 = vmatpush3.msra.mxu0 %v55_v4  ;;  %p252_p13 = por %p251_p12, %p250_p11 }
  0x23   :  { %194 = vmatprep.subr.mxu0 %v54_v5 }
  0x24   :  { %195 = vmatpush3.msra.mxu0 %v54_v5  ;;  %v51_v7 = vld [vmem:[#allocation2 + $0x8] sm:$0xff]  ;;  %v50_v9 = vld [vmem:[#allocation2] sm:$0xff]  ;;  %p253_p0 = pnand %p252_p13, %p246_p10 }
  0x25   :  { %197 = vmatmul.mubr.msk.f32.vlgmr.msra.gmra.mxu0 %vm58_vm1, %v53_v6 }
  0xe5   :  { %v198_v8 = vpop.f32.mrf.mxu0 }
  0xe6   :  { %v141_v10 = vadd.f32 %v198_v8, %v51_v7 }
  0xe7   :  { %v131_v11 = vpop.f32.mrf.mxu0 }
  0xe8   :  { %144 = vst.msk [vmem:[#allocation2 + $0x8] sm:$0xff] %vm47_vm0, %v141_v10  ;;  %v140_v12 = vadd.f32 %v131_v11, %v50_v9 }
  0xea   :  { %143 = vst.msk [vmem:[#allocation2] sm:$0xff] %vm47_vm0, %v140_v12 }
  0xef   :  { %v149_v14 = vld [vmem:[#allocation2 + $0x8] sm:$0xff] }
  0xf0   :  { %v158_v15 = vadd.f32 %v181_v13, %v149_v14 }
  0xf1   :  { %v148_v16 = vld [vmem:[#allocation2] sm:$0xff] }
  0xf2   :  { %v157_v17 = vadd.f32 %v181_v13, %v148_v16  ;;  %160 = vst.msk [vmem:[#allocation8 + $0x8] sm:$0xff] %vm47_vm0, %v158_v15 }
  0xf4   :  { %159 = vst.msk [vmem:[#allocation8] sm:$0xff] %vm47_vm0, %v157_v17 }
  0xf5   :  { %256 = shalt.err (!%p253_p0)
}
  0xf6   :  { %172 = dma.vmem_to_hbm [thread:$0]  %s167_s25, 256, %s329_s3, [#allocation5], %s272_s15, %s272_s15, %s273_s16  }
  0xf7   :  { %269 = dma.done.wait [#allocation5], 256  }
  0xf8   :  { %270 = vsyncadd [#allocation5], 4294967040 }
  0xf9   :  { %176 = vsyncpa [#allocation4], 1 }
  0xfa   :  { %177 = vsyncpa [#allocation7], 1 }
  0xfb   :  { %178 = vsyncpa [#allocation5], 1 }

</bundles_post_ra>
